<compile_context>
chip_gen: v6e
topology: v6e:2x2x1
jax: 0.10.0
libtpu: 0.0.40
codegen_flags: <defaults>
</compile_context>

<pallas_src>
import numpy as np
import jax
import jax.numpy as jnp
from jax.experimental import pallas as pl
from jax.experimental.pallas import tpu as pltpu

EPS = 1e-7


def _cdiv(a, b):
    return -(-a // b)


def _round_up(v, m):
    return ((v + m - 1) // m) * m


def _hann_window(win_length):
    # torch.hann_window default is periodic=True
    n = np.arange(win_length, dtype=np.float64)
    return 0.5 - 0.5 * np.cos(2.0 * np.pi * n / win_length)


def _dft_bases(fft_size, win_length):
    """Windowed DFT bases in f64: cos/sin of shape (fft_size, n_freq)."""
    # torch.stft centers the (shorter) window inside an fft_size-long frame.
    w = _hann_window(win_length)
    left = (fft_size - win_length) // 2
    w_full = np.zeros(fft_size, dtype=np.float64)
    w_full[left:left + win_length] = w
    n_freq = fft_size // 2 + 1
    n = np.arange(fft_size, dtype=np.float64)[:, None]
    k = np.arange(n_freq, dtype=np.float64)[None, :]
    ang = 2.0 * np.pi * n * k / fft_size
    cosb = w_full[:, None] * np.cos(ang)
    sinb = w_full[:, None] * np.sin(ang)
    return cosb, sinb, n_freq


def _frame(x, fft_size, hop_size):
    # x: (B, T) -> (B, n_frames, fft_size). Matches torch.stft(center=True,
    # pad_mode='reflect') framing.
    pad = fft_size // 2
    xp = jnp.pad(x, ((0, 0), (pad, pad)), mode="reflect")
    T = x.shape[1]
    n_frames = 1 + T // hop_size
    starts = jnp.arange(n_frames) * hop_size
    idx = starts[:, None] + jnp.arange(fft_size)[None, :]
    # TODO(synk): replace this XLA gather with in-kernel framing for long signals.
    return xp[:, idx]


def _make_kernel(tm, f_main, eps):
    grp = tm // 8

    def group_sum8(a):
        # (tm, f_main) -> (8, f_main): sum over vreg-aligned sublane groups (VPU only).
        return jnp.sum(a.reshape(grp, 8, f_main), axis=0)

    def kernel(x_ref, y_ref, basis_ref, o_ref):
        # Zero this core's accumulator block at the start of its reduction loop.
        @pl.when(pl.program_id(1) == 0)
        def _():
            o_ref[...] = jnp.zeros_like(o_ref)

        basis = basis_ref[...]
        # bf16 MXU matmuls, f32 accumulation. RHS columns: [cos(0..f_main-1) |
        # sin(0..f_main-1)] -> no zero-padded frequency columns.
        zx = jnp.dot(x_ref[...], basis, preferred_element_type=jnp.float32)
        zy = jnp.dot(y_ref[...], basis, preferred_element_type=jnp.float32)

        x_pow = jnp.maximum(zx[:, :f_main] ** 2 + zx[:, f_main:] ** 2, eps)
        y_pow = jnp.maximum(zy[:, :f_main] ** 2 + zy[:, f_main:] ** 2, eps)

        # (y_mag - x_mag)^2 without forming either magnitude (one sqrt/elem).
        d2 = jnp.maximum(x_pow + y_pow - 2.0 * jnp.sqrt(x_pow * y_pow), 0.0)
        # |log y_mag - log x_mag| == 0.5 * |log(y_pow / x_pow)| (one log/elem).
        abs_log = 0.5 * jnp.abs(jnp.log(y_pow / x_pow))

        # Full-slab, unmasked accumulation into the resident (24, f_main) block.
        o_ref[0:8, :] += group_sum8(d2)
        o_ref[8:16, :] += group_sum8(y_pow)
        o_ref[16:24, :] += group_sum8(abs_log)

    return kernel


def stft_loss(x, y, fft_size=1024, hop_size=120, win_length=600, tm=None):
    """Returns (sc_loss, mag_loss) matching STFTLoss.forward semantics."""
    assert x.shape == y.shape
    cosb, sinb, n_freq = _dft_bases(fft_size, win_length)

    # Frequency packing: bins 0..k_main-1 go through the kernel (lane-dense),
    # the remaining bins (Nyquist for power-of-two fft sizes) are done in glue.
    f_main = max(128, (n_freq // 128) * 128)
    k_main = min(n_freq, f_main)
    n_rem = n_freq - k_main

    basis_main = np.zeros((fft_size, 2 * f_main), dtype=np.float64)
    basis_main[:, :k_main] = cosb[:, :k_main]
    basis_main[:, f_main:f_main + k_main] = sinb[:, :k_main]
    basis_main = jnp.asarray(basis_main, jnp.bfloat16)

    xf = _frame(x, fft_size, hop_size).reshape(-1, fft_size)
    yf = _frame(y, fft_size, hop_size).reshape(-1, fft_size)
    n_rows = xf.shape[0]

    # Adaptive row tile: bf16-sublane friendly (multiple of 16), sized so small
    # inputs do not drown in padding, capped for per-step VMEM.
    if tm is None:
        tm = min(512, max(16, _round_up(_cdiv(n_rows, 2), 16)))
    tm = _round_up(tm, 16)

    # Use the 2-way TensorCore split only when both cores get real work.
    n_cores = 2 if n_rows >= 2 * tm else 1
    n_steps = _cdiv(n_rows, n_cores * tm)
    rows_pad = n_cores * n_steps * tm

    def prep(f):
        f = f.astype(jnp.bfloat16)
        return jnp.pad(f, ((0, rows_pad - n_rows), (0, 0)))

    kernel = _make_kernel(tm, f_main, EPS)

    sums = pl.pallas_call(
        kernel,
        out_shape=jax.ShapeDtypeStruct((n_cores * 24, f_main), jnp.float32),
        grid_spec=pltpu.PrefetchScalarGridSpec(
            num_scalar_prefetch=0,
            grid=(n_cores, n_steps),
            in_specs=[
                pl.BlockSpec((tm, fft_size), lambda c, j: (c * n_steps + j, 0)),
                pl.BlockSpec((tm, fft_size), lambda c, j: (c * n_steps + j, 0)),
                pl.BlockSpec((fft_size, 2 * f_main), lambda c, j: (0, 0)),
            ],
            out_specs=pl.BlockSpec((24, f_main), lambda c, j: (c, 0)),
        ),
        compiler_params=pltpu.CompilerParams(
            dimension_semantics=("parallel", "arbitrary")),
    )(prep(xf), prep(yf), basis_main)

    # Combine per-core blocks and the 8 sublane partials, then reduce over lanes.
    s = sums.reshape(n_cores, 3, 8, f_main).sum(axis=(0, 2))  # (3, f_main)
    sum_sq_diff = jnp.sum(s[0])
    # Padded rows (and padded freq columns when n_freq < 128) contribute exactly
    # eps each to sum(|Y|^2) and exactly 0 to the other sums -> exact correction.
    n_pad_elems = rows_pad * f_main - n_rows * k_main
    sum_sq_y = jnp.sum(s[1]) - jnp.float32(EPS) * n_pad_elems
    sum_abs_log = jnp.sum(s[2])

    if n_rem > 0:
        # Remainder bins (Nyquist): tiny exact f32 matmul in glue.
        cos_r = jnp.asarray(cosb[:, k_main:n_freq], jnp.float32)
        sin_r = jnp.asarray(sinb[:, k_main:n_freq], jnp.float32)
        xr = jnp.einsum("rf,fk->rk", xf, cos_r, precision="highest")
        xi = jnp.einsum("rf,fk->rk", xf, sin_r, precision="highest")
        yr = jnp.einsum("rf,fk->rk", yf, cos_r, precision="highest")
        yi = jnp.einsum("rf,fk->rk", yf, sin_r, precision="highest")
        x_pow_r = jnp.maximum(xr * xr + xi * xi, EPS)
        y_pow_r = jnp.maximum(yr * yr + yi * yi, EPS)
        x_mag_r = jnp.sqrt(x_pow_r)
        y_mag_r = jnp.sqrt(y_pow_r)
        sum_sq_diff += jnp.sum((y_mag_r - x_mag_r) ** 2)
        sum_sq_y += jnp.sum(y_pow_r)
        sum_abs_log += jnp.sum(jnp.abs(jnp.log(y_mag_r) - jnp.log(x_mag_r)))

    sc_loss = jnp.sqrt(sum_sq_diff) / jnp.sqrt(sum_sq_y)   # Frobenius-norm ratio
    mag_loss = sum_abs_log / (n_rows * n_freq)              # L1 loss, 'mean'
    return sc_loss, mag_loss


def _ref_loss(x, y, fft_size, hop_size, win_length):
    # Pure-JAX f32 reference (same math, no Pallas) used for validation.
    cosb, sinb, _ = _dft_bases(fft_size, win_length)
    cosb = jnp.asarray(cosb, jnp.float32)
    sinb = jnp.asarray(sinb, jnp.float32)

    def mag(sig):
        fr = _frame(sig, fft_size, hop_size)
        re = jnp.einsum("bnf,fk->bnk", fr, cosb, precision="highest")
        im = jnp.einsum("bnf,fk->bnk", fr, sinb, precision="highest")
        return jnp.sqrt(jnp.maximum(re * re + im * im, EPS))

    x_mag = mag(x)
    y_mag = mag(y)
    sc = jnp.linalg.norm(y_mag - x_mag) / jnp.linalg.norm(y_mag)
    ml = jnp.mean(jnp.abs(jnp.log(y_mag) - jnp.log(x_mag)))
    return sc, ml


if __name__ == "__main__":
    key = jax.random.PRNGKey(0)
    kx, ky = jax.random.split(key)
    B, T = 2, 512
    x = jax.random.normal(kx, (B, T), dtype=jnp.float32)
    y = jax.random.normal(ky, (B, T), dtype=jnp.float32)

    loss_fn = jax.jit(
        stft_loss,
        static_argnames=("fft_size", "hop_size", "win_length", "tm"))
    sc_loss, mag_loss = loss_fn(x, y, fft_size=256, hop_size=64, win_length=200)
    jax.block_until_ready((sc_loss, mag_loss))

    sc_ref, mag_ref = _ref_loss(x, y, fft_size=256, hop_size=64, win_length=200)
    # bf16 MXU inputs (f32 accumulation) vs a full-f32 reference -> modest rtol.
    np.testing.assert_allclose(np.asarray(sc_loss), np.asarray(sc_ref),
                               rtol=1e-2, atol=1e-4)
    np.testing.assert_allclose(np.asarray(mag_loss), np.asarray(mag_ref),
                               rtol=1e-2, atol=1e-4)

    print("KERNEL_OK")
</pallas_src>

<mosaic_0001>
module attributes {stable_mosaic.version = 11 : i64} {
  func.func @kernel(%arg0: i32, %arg1: i32, %arg2: memref<16x256xbf16, #tpu.memory_space<vmem>>, %arg3: memref<16x256xbf16, #tpu.memory_space<vmem>>, %arg4: memref<256x256xbf16, #tpu.memory_space<vmem>>, %arg5: memref<24x128xf32, #tpu.memory_space<vmem>>) attributes {dimension_semantics = [#tpu.dimension_semantics<parallel>, #tpu.dimension_semantics<arbitrary>], iteration_bounds = array<i64: 1, 2>, scalar_prefetch = 0 : i64, scratch_operands = 0 : i64, tpu.core_type = #tpu.core_type<tc>, window_params = [{transform_indices = @transform_0, window_bounds = array<i64: 16, 256>}, {transform_indices = @transform_1, window_bounds = array<i64: 16, 256>}, {pipeline_mode = #tpu.pipeline_mode<synchronous>, transform_indices = @transform_2, window_bounds = array<i64: 256, 256>}, {transform_indices = @transform_3, window_bounds = array<i64: 24, 128>}]} {
    %c0_i32 = arith.constant 0 : i32
    %0 = arith.cmpi eq, %arg1, %c0_i32 : i32
    %1 = arith.extui %0 : i1 to i32
    %c0_i32_0 = arith.constant 0 : i32
    %2 = arith.cmpi ne, %1, %c0_i32_0 : i32
    scf.if %2 {
      %cst_25 = arith.constant 0.000000e+00 : f32
      %50 = vector.broadcast %cst_25 : f32 to vector<24x128xf32>
      %c0_26 = arith.constant 0 : index
      %c0_27 = arith.constant 0 : index
      %51 = vector.load %arg5[%c0_26, %c0_27] : memref<24x128xf32, #tpu.memory_space<vmem>>, vector<24x128xf32>
      tpu.vector_store %arg5[%c0_26, %c0_27], %50 {strides = array<i32>} : memref<24x128xf32, #tpu.memory_space<vmem>>, vector<24x128xf32>,
    } else {
    }
    %c0 = arith.constant 0 : index
    %c0_1 = arith.constant 0 : index
    %3 = vector.load %arg4[%c0, %c0_1] : memref<256x256xbf16, #tpu.memory_space<vmem>>, vector<256x256xbf16>
    %c0_2 = arith.constant 0 : index
    %c0_3 = arith.constant 0 : index
    %4 = vector.load %arg2[%c0_2, %c0_3] : memref<16x256xbf16, #tpu.memory_space<vmem>>, vector<16x256xbf16>
    %cst = arith.constant dense<0.000000e+00> : vector<16x256xf32>
    %5 = tpu.matmul %4, %3, %cst {dimension_numbers = #tpu.dot_dimension_numbers<[1], [0], [0], [1], [0, 0, 1, 1], [], []>} : vector<16x256xbf16>, vector<256x256xbf16>, vector<16x256xf32> -> vector<16x256xf32>
    %c0_4 = arith.constant 0 : index
    %c0_5 = arith.constant 0 : index
    %6 = vector.load %arg3[%c0_4, %c0_5] : memref<16x256xbf16, #tpu.memory_space<vmem>>, vector<16x256xbf16>
    %cst_6 = arith.constant dense<0.000000e+00> : vector<16x256xf32>
    %7 = tpu.matmul %6, %3, %cst_6 {dimension_numbers = #tpu.dot_dimension_numbers<[1], [0], [0], [1], [0, 0, 1, 1], [], []>} : vector<16x256xbf16>, vector<256x256xbf16>, vector<16x256xf32> -> vector<16x256xf32>
    %8 = vector.extract_strided_slice %5 {offsets = [0, 0], sizes = [16, 128], strides = [1, 1]} : vector<16x256xf32> to vector<16x128xf32>
    %9 = arith.mulf %8, %8 : vector<16x128xf32>
    %10 = vector.extract_strided_slice %5 {offsets = [0, 128], sizes = [16, 128], strides = [1, 1]} : vector<16x256xf32> to vector<16x128xf32>
    %11 = arith.mulf %10, %10 : vector<16x128xf32>
    %12 = arith.addf %9, %11 : vector<16x128xf32>
    %cst_7 = arith.constant 1.000000e-07 : f32
    %13 = vector.broadcast %cst_7 : f32 to vector<16x128xf32>
    %14 = arith.maximumf %12, %13 : vector<16x128xf32>
    %15 = vector.extract_strided_slice %7 {offsets = [0, 0], sizes = [16, 128], strides = [1, 1]} : vector<16x256xf32> to vector<16x128xf32>
    %16 = arith.mulf %15, %15 : vector<16x128xf32>
    %17 = vector.extract_strided_slice %7 {offsets = [0, 128], sizes = [16, 128], strides = [1, 1]} : vector<16x256xf32> to vector<16x128xf32>
    %18 = arith.mulf %17, %17 : vector<16x128xf32>
    %19 = arith.addf %16, %18 : vector<16x128xf32>
    %cst_8 = arith.constant 1.000000e-07 : f32
    %20 = vector.broadcast %cst_8 : f32 to vector<16x128xf32>
    %21 = arith.maximumf %19, %20 : vector<16x128xf32>
    %22 = arith.addf %14, %21 : vector<16x128xf32>
    %23 = arith.mulf %14, %21 : vector<16x128xf32>
    %24 = math.sqrt %23 : vector<16x128xf32>
    %cst_9 = arith.constant 2.000000e+00 : f32
    %25 = vector.broadcast %cst_9 : f32 to vector<16x128xf32>
    %26 = arith.mulf %25, %24 : vector<16x128xf32>
    %27 = arith.subf %22, %26 : vector<16x128xf32>
    %cst_10 = arith.constant 0.000000e+00 : f32
    %28 = vector.broadcast %cst_10 : f32 to vector<16x128xf32>
    %29 = arith.maximumf %27, %28 : vector<16x128xf32>
    %30 = arith.divf %21, %14 : vector<16x128xf32>
    %31 = math.log %30 : vector<16x128xf32>
    %32 = math.absf %31 : vector<16x128xf32>
    %cst_11 = arith.constant 5.000000e-01 : f32
    %33 = vector.broadcast %cst_11 : f32 to vector<16x128xf32>
    %34 = arith.mulf %33, %32 : vector<16x128xf32>
    %c0_12 = arith.constant 0 : index
    %c0_13 = arith.constant 0 : index
    %35 = vector.load %arg5[%c0_12, %c0_13] : memref<24x128xf32, #tpu.memory_space<vmem>>, vector<8x128xf32>
    %36 = vector.shape_cast %29 : vector<16x128xf32> to vector<2x8x128xf32>
    %cst_14 = arith.constant dense<0.000000e+00> : vector<8x128xf32>
    %37 = vector.multi_reduction <add>, %36, %cst_14 [0] : vector<2x8x128xf32> to vector<8x128xf32>
    %38 = arith.addf %35, %37 : vector<8x128xf32>
    %c0_15 = arith.constant 0 : index
    %c0_16 = arith.constant 0 : index
    %39 = vector.load %arg5[%c0_15, %c0_16] : memref<24x128xf32, #tpu.memory_space<vmem>>, vector<8x128xf32>
    tpu.vector_store %arg5[%c0_15, %c0_16], %38 {strides = array<i32>} : memref<24x128xf32, #tpu.memory_space<vmem>>, vector<8x128xf32>,
    %c8 = arith.constant 8 : index
    %c0_17 = arith.constant 0 : index
    %40 = vector.load %arg5[%c8, %c0_17] : memref<24x128xf32, #tpu.memory_space<vmem>>, vector<8x128xf32>
    %41 = vector.shape_cast %21 : vector<16x128xf32> to vector<2x8x128xf32>
    %cst_18 = arith.constant dense<0.000000e+00> : vector<8x128xf32>
    %42 = vector.multi_reduction <add>, %41, %cst_18 [0] : vector<2x8x128xf32> to vector<8x128xf32>
    %43 = arith.addf %40, %42 : vector<8x128xf32>
    %c8_19 = arith.constant 8 : index
    %c0_20 = arith.constant 0 : index
    %44 = vector.load %arg5[%c8_19, %c0_20] : memref<24x128xf32, #tpu.memory_space<vmem>>, vector<8x128xf32>
    tpu.vector_store %arg5[%c8_19, %c0_20], %43 {strides = array<i32>} : memref<24x128xf32, #tpu.memory_space<vmem>>, vector<8x128xf32>,
    %c16 = arith.constant 16 : index
    %c0_21 = arith.constant 0 : index
    %45 = vector.load %arg5[%c16, %c0_21] : memref<24x128xf32, #tpu.memory_space<vmem>>, vector<8x128xf32>
    %46 = vector.shape_cast %34 : vector<16x128xf32> to vector<2x8x128xf32>
    %cst_22 = arith.constant dense<0.000000e+00> : vector<8x128xf32>
    %47 = vector.multi_reduction <add>, %46, %cst_22 [0] : vector<2x8x128xf32> to vector<8x128xf32>
    %48 = arith.addf %45, %47 : vector<8x128xf32>
    %c16_23 = arith.constant 16 : index
    %c0_24 = arith.constant 0 : index
    %49 = vector.load %arg5[%c16_23, %c0_24] : memref<24x128xf32, #tpu.memory_space<vmem>>, vector<8x128xf32>
    tpu.vector_store %arg5[%c16_23, %c0_24], %48 {strides = array<i32>} : memref<24x128xf32, #tpu.memory_space<vmem>>, vector<8x128xf32>,
    return
  }
  func.func @transform_0(%arg0: i32, %arg1: i32) -> (i32, i32) {
    %c2_i32 = arith.constant 2 : i32
    %0 = arith.muli %arg0, %c2_i32 : i32
    %1 = arith.addi %0, %arg1 : i32
    %c0_i32 = arith.constant 0 : i32
    %c0_i32_0 = arith.constant 0 : i32
    return %1, %c0_i32 : i32, i32
  }
  func.func @transform_1(%arg0: i32, %arg1: i32) -> (i32, i32) {
    %c2_i32 = arith.constant 2 : i32
    %0 = arith.muli %arg0, %c2_i32 : i32
    %1 = arith.addi %0, %arg1 : i32
    %c0_i32 = arith.constant 0 : i32
    %c0_i32_0 = arith.constant 0 : i32
    return %1, %c0_i32 : i32, i32
  }
  func.func @transform_2(%arg0: i32, %arg1: i32) -> (i32, i32) {
    %c0_i32 = arith.constant 0 : i32
    %c0_i32_0 = arith.constant 0 : i32
    %c0_i32_1 = arith.constant 0 : i32
    return %c0_i32, %c0_i32_0 : i32, i32
  }
  func.func @transform_3(%arg0: i32, %arg1: i32) -> (i32, i32) {
    %c0_i32 = arith.constant 0 : i32
    %c0_i32_0 = arith.constant 0 : i32
    return %arg0, %c0_i32 : i32, i32
  }
}

</mosaic_0001>

<bundles_post_ra>
// kernel: stft_loss.1
= control target key start
LH: loop header
LB: loop body
LE: loop exit
PB: predicated region body
PF: predicated region fallthrough
CT: control target
= control target key end

     0   :  { %s878_s12 = smov 0   ;;  %s880_s13 = smov 0   ;;  %s1042_s0 = inlined_call_operand.vmem [shape: bf16[32,256], index: 0, kind: input, shape index: {}]   ;;  %s1043_s1 = inlined_call_operand.vmem [shape: bf16[32,256], index: 1, kind: input, shape index: {}]   ;;  %s1044_s2 = inlined_call_operand.vmem [shape: bf16[256,256], index: 2, kind: input, shape index: {}]   ;;  %s1045_s3 = inlined_call_operand.vmem [shape: f32[24,128], index: 3, kind: output, shape index: {}]  }
   0x1   :  { %s882_s14 = smov 0  }
   0x2 LB: > { %s22_s15 = sadd.s32 1, %s851_s13  ;;  %p692_p0 = scmp.ge.s32.totalorder %s855_s14, 1  ;;  %s855_s14 = sphi %s882_s14, %s13_s14   ;;  %s851_s13 = sphi %s880_s13, %s1047_s13   ;;  %s847_s12 = sphi %s878_s12, %s1046_s12  }
   0x3   : > { %p23_p1 = scmp.ge.s32.totalorder %s22_s15, 2  ;;  %p179_p2 = scmp.lt.s32.totalorder %s855_s14, 3 }
   0x5   : > { %s1049_s15 = smov (%p23_p1, %s22_s15), 0  ;;  %p180_p3 = pnand %p692_p0, %p179_p2 }
   0x6   : > { %s693_s16 = sshll.u32 (!%p180_p3), %s847_s12, 1  ;;  %p699_p5 = scmp.ne.s32.totalorder (!%p180_p3), %s847_s12, 0 }
   0x7   : > { %183 = sbr.rel (%p180_p3) target bundleno = 331 (0x14b), region = 32  ;;  %p217_p4 = scmp.lt.s32.totalorder (!%p180_p3), %s693_s16, 3 }
   0xc   : > { %s1051_s16 = smov (!%p217_p4, %s693_s16), 3  ;;  %245 = sbr.rel (%p699_p5) target bundleno = 20 (0x14), region = 36 }
   0xd   : > { %s740_s17 = sshll.u32 %s1051_s16, 3 }
   0xe   : > { %s899_s20 = scalar_lea.vmem %s1042_s0, %s740_s17  ;;  %s904_s23 = scalar_lea.vmem %s1043_s1, %s740_s17 }
  0x11   : > { %v857_v0 = vmov 0.0  }
  0x12   : > { %246 = vst [vmem:[%s1045_s3] sm:$0xff] %v857_v0  ;;  %247 = vst [vmem:[%s1045_s3 + $0x8] sm:$0xff] %v857_v0 }
  0x13   : > { %248 = vst [vmem:[%s1045_s3 + $0x10] sm:$0xff] %v857_v0 }
  0x14 PF: > { %v767_v1 = vld [vmem:[%s1044_s2 + $0x74] ss:$8 sps:$4 sm:$0xff]   ;;  %v769_v2 = vld [vmem:[%s1044_s2 + $0x70] ss:$8 sps:$4 sm:$0xff]   ;;  %v770_v3 = vld [vmem:[%s1044_s2 + $0x64] ss:$8 sps:$4 sm:$0xff]  }
  0x15   : > { %453 = vmatprep.subr.bf16.mxu0 %v767_v1  ;;  %508 = vmatprep.subr.bf16.mxu1 %v767_v1  ;;  %v772_v4 = vld [vmem:[%s1044_s2 + $0x60] ss:$8 sps:$4 sm:$0xff]   ;;  %v773_v5 = vld [vmem:[%s1044_s2 + $0x54] ss:$8 sps:$4 sm:$0xff]   ;;  %v775_v6 = vld [vmem:[%s1044_s2 + $0x50] ss:$8 sps:$4 sm:$0xff]  }
  0x16   : > { %454 = vmatpush1.bf16.msra.mxu0 %v769_v2  ;;  %509 = vmatpush1.bf16.msra.mxu1 %v769_v2  ;;  %v776_v7 = vld [vmem:[%s1044_s2 + $0x44] ss:$8 sps:$4 sm:$0xff]   ;;  %v778_v8 = vld [vmem:[%s1044_s2 + $0x40] ss:$8 sps:$4 sm:$0xff]   ;;  %v779_v9 = vld [vmem:[%s1044_s2 + $0x34] ss:$8 sps:$4 sm:$0xff]  }
  0x17   : > { %455 = vmatprep.subr.bf16.mxu0 %v770_v3  ;;  %510 = vmatprep.subr.bf16.mxu1 %v770_v3  ;;  %v781_v10 = vld [vmem:[%s1044_s2 + $0x30] ss:$8 sps:$4 sm:$0xff]   ;;  %v782_v11 = vld [vmem:[%s1044_s2 + $0x24] ss:$8 sps:$4 sm:$0xff]   ;;  %v784_v12 = vld [vmem:[%s1044_s2 + $0x20] ss:$8 sps:$4 sm:$0xff]  }
  0x18   : > { %v785_v13 = vld [vmem:[%s1044_s2 + $0x14] ss:$8 sps:$4 sm:$0xff]   ;;  %v817_v14 = vld [vmem:[%s899_s20 + $0x4] ss:$8 sps:$4 sm:$0xff]   ;;  %v787_v15 = vld [vmem:[%s1044_s2 + $0x10] ss:$8 sps:$4 sm:$0xff]  }
  0x19   : > { %v820_v16 = vld [vmem:[%s904_s23 + $0x4] ss:$8 sps:$4 sm:$0xff]   ;;  %485 = vmatprep.mubr.bf16.mxu0 %v817_v14  ;;  %v790_v18 = vld [vmem:[%s1044_s2] ss:$8 sps:$4 sm:$0xff]   ;;  %v791_v19 = vld [vmem:[%s1044_s2 + $0xf4] ss:$8 sps:$4 sm:$0xff]  }
  0x1a   : > { %456 = vmatpush1.bf16.msra.mxu0 %v772_v4  ;;  %511 = vmatpush1.bf16.msra.mxu1 %v772_v4  ;;  %v788_v17 = vld [vmem:[%s1044_s2 + $0x4] ss:$8 sps:$4 sm:$0xff]   ;;  %v793_v20 = vld [vmem:[%s1044_s2 + $0xf0] ss:$8 sps:$4 sm:$0xff]   ;;  %v796_v22 = vld [vmem:[%s1044_s2 + $0xe0] ss:$8 sps:$4 sm:$0xff]  }
  0x1b   : > { %457 = vmatprep.subr.bf16.mxu0 %v773_v5  ;;  %512 = vmatprep.subr.bf16.mxu1 %v773_v5  ;;  %v794_v21 = vld [vmem:[%s1044_s2 + $0xe4] ss:$8 sps:$4 sm:$0xff]   ;;  %v797_v23 = vld [vmem:[%s1044_s2 + $0xd4] ss:$8 sps:$4 sm:$0xff]   ;;  %v799_v24 = vld [vmem:[%s1044_s2 + $0xd0] ss:$8 sps:$4 sm:$0xff]  }
  0x1c   : > { %540 = vmatprep.mubr.bf16.mxu1 %v820_v16  ;;  %v800_v25 = vld [vmem:[%s1044_s2 + $0xc4] ss:$8 sps:$4 sm:$0xff]   ;;  %v802_v26 = vld [vmem:[%s1044_s2 + $0xc0] ss:$8 sps:$4 sm:$0xff]   ;;  %v803_v27 = vld [vmem:[%s1044_s2 + $0xb4] ss:$8 sps:$4 sm:$0xff]  }
  0x1d   : > { %v805_v28 = vld [vmem:[%s1044_s2 + $0xb0] ss:$8 sps:$4 sm:$0xff]   ;;  %v806_v29 = vld [vmem:[%s1044_s2 + $0xa4] ss:$8 sps:$4 sm:$0xff]   ;;  %v808_v30 = vld [vmem:[%s1044_s2 + $0xa0] ss:$8 sps:$4 sm:$0xff]  }
  0x1e   : > { %458 = vmatpush1.bf16.msra.mxu0 %v775_v6  ;;  %513 = vmatpush1.bf16.msra.mxu1 %v775_v6  ;;  %v809_v31 = vld [vmem:[%s1044_s2 + $0x94] ss:$8 sps:$4 sm:$0xff]   ;;  %v811_v32 = vld [vmem:[%s1044_s2 + $0x90] ss:$8 sps:$4 sm:$0xff]   ;;  %v812_v33 = vld [vmem:[%s1044_s2 + $0x84] ss:$8 sps:$4 sm:$0xff]  }
  0x1f   : > { %459 = vmatprep.subr.bf16.mxu0 %v776_v7  ;;  %514 = vmatprep.subr.bf16.mxu1 %v776_v7  ;;  %v814_v34 = vld [vmem:[%s1044_s2 + $0x80] ss:$8 sps:$4 sm:$0xff]  }
  0x20   : > { %v815_v35 = vld [vmem:[%s899_s20] ss:$8 sps:$4 sm:$0xff]  }
  0x21   : > { %v818_v36 = vld [vmem:[%s904_s23] ss:$8 sps:$4 sm:$0xff]  }
  0x22   : > { %460 = vmatpush1.bf16.msra.mxu0 %v778_v8  ;;  %515 = vmatpush1.bf16.msra.mxu1 %v778_v8  ;;  %v607_v63 = vld [vmem:[%s1045_s3 + $0x8] sm:$0xff] }
  0x23   : > { %461 = vmatprep.subr.bf16.mxu0 %v779_v9  ;;  %516 = vmatprep.subr.bf16.mxu1 %v779_v9 }
  0x26   : > { %462 = vmatpush1.bf16.msra.mxu0 %v781_v10  ;;  %517 = vmatpush1.bf16.msra.mxu1 %v781_v10 }
  0x27   : > { %463 = vmatprep.subr.bf16.mxu0 %v782_v11  ;;  %518 = vmatprep.subr.bf16.mxu1 %v782_v11 }
  0x2a   : > { %464 = vmatpush1.bf16.msra.mxu0 %v784_v12  ;;  %519 = vmatpush1.bf16.msra.mxu1 %v784_v12 }
  0x2b   : > { %465 = vmatprep.subr.bf16.mxu0 %v785_v13  ;;  %520 = vmatprep.subr.bf16.mxu1 %v785_v13 }
  0x2e   : > { %466 = vmatpush1.bf16.msra.mxu0 %v787_v15  ;;  %521 = vmatpush1.bf16.msra.mxu1 %v787_v15 }
  0x2f   : > { %467 = vmatprep.subr.bf16.mxu0 %v788_v17  ;;  %522 = vmatprep.subr.bf16.mxu1 %v788_v17 }
  0x32   : > { %468 = vmatpush1.bf16.msra.mxu0 %v790_v18  ;;  %523 = vmatpush1.bf16.msra.mxu1 %v790_v18 }
  0x33   : > { %469 = vmatprep.subr.bf16.mxu0 %v791_v19  ;;  %524 = vmatprep.subr.bf16.mxu1 %v791_v19 }
  0x36   : > { %470 = vmatpush2.bf16.msra.mxu0 %v793_v20  ;;  %525 = vmatpush2.bf16.msra.mxu1 %v793_v20 }
  0x37   : > { %471 = vmatprep.subr.bf16.mxu0 %v794_v21  ;;  %526 = vmatprep.subr.bf16.mxu1 %v794_v21 }
  0x3a   : > { %472 = vmatpush2.bf16.msra.mxu0 %v796_v22  ;;  %527 = vmatpush2.bf16.msra.mxu1 %v796_v22 }
  0x3b   : > { %473 = vmatprep.subr.bf16.mxu0 %v797_v23  ;;  %528 = vmatprep.subr.bf16.mxu1 %v797_v23 }
  0x3e   : > { %474 = vmatpush2.bf16.msra.mxu0 %v799_v24  ;;  %529 = vmatpush2.bf16.msra.mxu1 %v799_v24 }
  0x3f   : > { %475 = vmatprep.subr.bf16.mxu0 %v800_v25  ;;  %530 = vmatprep.subr.bf16.mxu1 %v800_v25  ;;  %v603_v25 = vld [vmem:[%s1045_s3] sm:$0xff] }
  0x42   : > { %476 = vmatpush2.bf16.msra.mxu0 %v802_v26  ;;  %531 = vmatpush2.bf16.msra.mxu1 %v802_v26 }
  0x43   : > { %477 = vmatprep.subr.bf16.mxu0 %v803_v27  ;;  %532 = vmatprep.subr.bf16.mxu1 %v803_v27 }
  0x46   : > { %478 = vmatpush2.bf16.msra.mxu0 %v805_v28  ;;  %533 = vmatpush2.bf16.msra.mxu1 %v805_v28 }
  0x47   : > { %479 = vmatprep.subr.bf16.mxu0 %v806_v29  ;;  %534 = vmatprep.subr.bf16.mxu1 %v806_v29 }
  0x4a   : > { %480 = vmatpush2.bf16.msra.mxu0 %v808_v30  ;;  %535 = vmatpush2.bf16.msra.mxu1 %v808_v30 }
  0x4b   : > { %481 = vmatprep.subr.bf16.mxu0 %v809_v31  ;;  %536 = vmatprep.subr.bf16.mxu1 %v809_v31 }
  0x4e   : > { %482 = vmatpush2.bf16.msra.mxu0 %v811_v32  ;;  %537 = vmatpush2.bf16.msra.mxu1 %v811_v32 }
  0x4f   : > { %483 = vmatprep.subr.bf16.mxu0 %v812_v33  ;;  %538 = vmatprep.subr.bf16.mxu1 %v812_v33 }
  0x52   : > { %484 = vmatpush2.bf16.msra.mxu0 %v814_v34  ;;  %539 = vmatpush2.bf16.msra.mxu1 %v814_v34 }
  0x55   : > { %486 = vmatmul.mubr.bf16.vlgmr.msra.gmra.mxu0 %v815_v35  ;;  %541 = vmatmul.mubr.bf16.vlgmr.msra.gmra.mxu1 %v818_v36  ;;  %v611_v35 = vld [vmem:[%s1045_s3 + $0x10] sm:$0xff] }
 0x115   : > { %v487_v37 = vpop.f32.mrf.mxu0  ;;  %v542_v38 = vpop.f32.mrf.mxu1 }
 0x116   : > { %v559_v39 = vmul.f32 %v542_v38, %v542_v38  ;;  %v551_v42 = vmul.f32 %v487_v37, %v487_v37 }
 0x117   : > { %v489_v40 = vpop.f32.mrf.mxu0  ;;  %v544_v41 = vpop.f32.mrf.mxu1 }
 0x118   : > { %v553_v43 = vmul.f32 %v489_v40, %v489_v40  ;;  %v561_v44 = vmul.f32 %v544_v41, %v544_v41 }
 0x119   : > { %v491_v45 = vpop.f32.mrf.mxu0  ;;  %v546_v46 = vpop.f32.mrf.mxu1 }
 0x11a   : > { %v555_v47 = vadd.f32 %v553_v43, %v551_v42  ;;  %v563_v48 = vadd.f32 %v561_v44, %v559_v39  ;;  %v552_v49 = vmul.f32 %v491_v45, %v491_v45  ;;  %v560_v50 = vmul.f32 %v546_v46, %v546_v46 }
 0x11b   : > { %v493_v51 = vpop.f32.mrf.mxu0  ;;  %v548_v52 = vpop.f32.mrf.mxu1 }
 0x11c   : > { %v557_v53 = vmax.f32 %v555_v47, 1e-07  ;;  %v565_v54 = vmax.f32 %v563_v48, 1e-07  ;;  %v554_v55 = vmul.f32 %v493_v51, %v493_v51  ;;  %v562_v56 = vmul.f32 %v548_v52, %v548_v52 }
 0x11e   : > { %821 = vrcp.f32 %v557_v53  ;;  %v569_v57 = vmul.f32 %v565_v54, %v557_v53  ;;  %v556_v58 = vadd.f32 %v554_v55, %v552_v49  ;;  %v564_v59 = vadd.f32 %v562_v56, %v560_v50 }
 0x11f   : > { %v567_v15 = vadd.f32 %v565_v54, %v557_v53 }
 0x120   : > { %823 = vrsqrt.f32 %v569_v57  ;;  %v558_v60 = vmax.f32 %v556_v58, 1e-07  ;;  %v566_v61 = vmax.f32 %v564_v59, 1e-07  ;;  %vm573_vm0 = vcmp.eq.f32.partialorder %v569_v57, inf }
 0x121   : > { %v576_v6 = vand.u32 2147483648, %v569_v57  ;;  %vm575_vm1 = vcmp.eq.f32.partialorder %v569_v57, 0.0 }
 0x122   : > { %825 = vrcp.f32 %v558_v60  ;;  %v570_v62 = vmul.f32 %v566_v61, %v558_v60  ;;  %v608_v0 = vadd.f32 %v566_v61, %v565_v54  ;;  %v568_v19 = vadd.f32 %v566_v61, %v558_v60 }
 0x124   : > { %827 = vrsqrt.f32 %v570_v62  ;;  %v609_v1 = vadd.f32 %v608_v0, %v607_v63  ;;  %vm580_vm2 = vcmp.eq.f32.partialorder %v570_v62, inf  ;;  %v583_v14 = vand.u32 2147483648, %v570_v62 }
 0x125   : > { %vm582_vm3 = vcmp.eq.f32.partialorder %v570_v62, 0.0 }
 0x126   : > { %610 = vst [vmem:[%s1045_s3 + $0x8] sm:$0xff] %v609_v1 }
 0x12b   : > { %v822_v2 = vpop.eup %821 }
 0x12c   : > { %v592_v3 = vmul.f32 %v822_v2, %v565_v54 }
 0x12d   : > { %v824_v4 = vpop.eup %823 }
 0x12e   : > { %v572_v5 = vmul.f32 %v824_v4, %v569_v57  ;;  %829 = vlog2.f32 %v592_v3 }
 0x12f   : > { %v826_v7 = vpop.eup %825 }
 0x130   : > { %v574_v8 = vsel %vm573_vm0, %v569_v57, %v572_v5  ;;  %v594_v10 = vmul.f32 %v826_v7, %v566_v61 }
 0x131   : > { %v577_v9 = vsel %vm575_vm1, %v576_v6, %v574_v8  ;;  %v828_v11 = vpop.eup %827 }
 0x132   : > { %v585_v12 = vmul.f32 2.0, %v577_v9  ;;  %v579_v13 = vmul.f32 %v828_v11, %v570_v62  ;;  %831 = vlog2.f32 %v594_v10 }
 0x134   : > { %v581_v16 = vsel %vm580_vm2, %v570_v62, %v579_v13  ;;  %v587_v18 = vsub.f32 %v567_v15, %v585_v12 }
 0x135   : > { %v584_v17 = vsel %vm582_vm3, %v583_v14, %v581_v16 }
 0x136   : > { %v586_v20 = vmul.f32 2.0, %v584_v17  ;;  %v589_v23 = vmax.f32 %v587_v18, 0.0 }
 0x138   : > { %v588_v21 = vsub.f32 %v568_v19, %v586_v20 }
 0x13a   : > { %v590_v24 = vmax.f32 %v588_v21, 0.0 }
 0x13b   : > { %v830_v22 = vpop.eup %829 }
 0x13c   : > { %v596_v26 = vmul.f32 0.6931472, %v830_v22  ;;  %v604_v27 = vadd.f32 %v590_v24, %v589_v23 }
 0x13e   : > { %v605_v28 = vadd.f32 %v604_v27, %v603_v25  ;;  %v599_v30 = vand.u32 2147483647, %v596_v26 }
 0x13f   : > { %v832_v29 = vpop.eup %831 }
 0x140   : > { %v598_v31 = vmul.f32 0.6931472, %v832_v29  ;;  %606 = vst [vmem:[%s1045_s3] sm:$0xff] %v605_v28  ;;  %v601_v33 = vmul.f32 0.5, %v599_v30 }
 0x142   : > { %v600_v32 = vand.u32 2147483647, %v598_v31 }
 0x144   : > { %v602_v34 = vmul.f32 0.5, %v600_v32 }
 0x146   : > { %v612_v36 = vadd.f32 %v602_v34, %v601_v33 }
 0x148   : > { %v613_v37 = vadd.f32 %v612_v36, %v611_v35 }
 0x14a   : > { %614 = vst [vmem:[%s1045_s3 + $0x10] sm:$0xff] %v613_v37 }
 0x14b PF: > { %s13_s14 = sadd.s32 1, %s855_s14   ;;  %s1046_s12 = smov %s851_s13 }
 0x14c   : > { %p10_p6 = scmp.ge.s32.totalorder %s13_s14, 4   ;;  %s1047_s13 = smov %s1049_s15 }
 0x14e   :  { %12 = sbr.rel (!%p10_p6) target bundleno = 2 (0x2), region = 69 }

</bundles_post_ra>
